<compile_context>
chip_gen: v7x
topology: tpu7x:2x2x1
jax: 0.10.0
libtpu: 0.0.40
codegen_flags: <defaults>
</compile_context>

<pallas_src>
import functools

import jax
import jax.numpy as jnp
from jax import lax
from jax.experimental import pallas as pl
from jax.experimental.pallas import tpu as pltpu


def _round_up(x, m):
    return ((x + m - 1) // m) * m


def _derive_tile(hw, cin, cout, *, lane_cap=131072, block_budget_bytes=16 << 20):
    """Pick an HW tile (multiple of 128 lanes) sized against a VMEM block budget.

    Budget is driven by pass 2 (the tighter pass): double-buffered f32 input
    (Cin) + output (Cout) blocks per lane. Returns (tile, padded_hw)."""
    per_lane = 2 * (cin + cout) * 4          # double-buffered in+out f32 bytes/lane
    cap = (block_budget_bytes // per_lane) // 128 * 128
    cap = max(128, min(max(128, lane_cap // 128 * 128), cap))
    hw128 = _round_up(hw, 128)
    n_tiles = -(-hw128 // cap)
    tile = _round_up(-(-hw128 // n_tiles), 128)
    return tile, tile * n_tiles


def _stats_kernel(x_ref, w_ref, g_ref, b_ref, aw_ref, sh_ref,
                  c_ref, s_acc, q_acc, *, eps, inv_m, pad_count, cin):
    """Pass 1: shifted per-channel sum / sumsq of z = W.x, finalize folded (W, shift).

    Grid is (N, hw_tiles); BOTH axes must stay 'arbitrary' (single-core running
    accumulators, outputs written only on the final step)."""
    n = pl.program_id(0)
    t = pl.program_id(1)
    first = jnp.logical_and(n == 0, t == 0)
    last = jnp.logical_and(n == pl.num_programs(0) - 1,
                           t == pl.num_programs(1) - 1)

    x = x_ref[...]                                   # (Cin, TILE)
    w = w_ref[...]                                   # (Cout, Cin)
    # 1x1 conv as Cin broadcast VPU FMAs (K=Cin is far too small for the MXU).
    z = w[:, 0:1] * x[0:1, :]                        # (Cout, TILE)
    for k in range(1, cin):
        z = z + w[:, k:k + 1] * x[k:k + 1, :]

    @pl.when(first)
    def _():
        # Per-channel shift (first-tile mean) to stabilize E[z^2] - mean^2.
        c_ref[...] = jnp.mean(z, axis=1, keepdims=True)
        s_acc[...] = jnp.zeros_like(s_acc)
        q_acc[...] = jnp.zeros_like(q_acc)

    zc = z - c_ref[...]
    s_acc[...] += jnp.sum(zc, axis=1, keepdims=True)          # (Cout, 1)
    q_acc[...] += jnp.sum(zc * zc, axis=1, keepdims=True)     # (Cout, 1)

    @pl.when(last)
    def _():
        c = c_ref[...]
        # Zero-padded lanes have z == 0 exactly (no conv bias), so each padded
        # lane contributed (-c) to s_acc and c^2 to q_acc; remove analytically.
        s = s_acc[...] + pad_count * c
        q = q_acc[...] - pad_count * (c * c)
        mean_c = s * inv_m                                     # E[z] - c
        var = jnp.maximum(q * inv_m - mean_c * mean_c, 0.0)    # E[(z-c)^2]-(E[z]-c)^2
        scale = g_ref[...] * lax.rsqrt(var + eps)              # (Cout, 1)
        aw_ref[...] = w * scale                                # BN scale folded into W
        sh_ref[...] = b_ref[...] - (mean_c + c) * scale        # conv bias cancels exactly


def _apply_kernel(x_ref, aw_ref, sh_ref, o_ref, *, cin):
    """Pass 2: out = relu((scale*W).x + shift), pure VPU streaming, lane-dense stores."""
    x = x_ref[...]                                   # (Cin, TILE)
    a = aw_ref[...]                                  # (Cout, Cin)
    y = a[:, 0:1] * x[0:1, :]                        # (Cout, TILE)
    for k in range(1, cin):
        y = y + a[:, k:k + 1] * x[k:k + 1, :]
    o_ref[...] = jnp.maximum(y + sh_ref[...], 0.0)


def dsc_block_forward(x, pw_weight, pw_bias, bn_gamma, bn_beta,
                      *, stride=2, eps=1e-5, lane_cap=131072):
    """x: (N, Cin, H, W) float32. pw_weight: (Cout, Cin, 1, 1)."""
    N, Cin, H, W = x.shape
    Cout = pw_weight.shape[0]

    # 1x1 conv with stride == spatial subsample then per-pixel channel mix.
    xs = x[:, :, ::stride, ::stride]                 # (N, Cin, Ho, Wo)
    Ho, Wo = xs.shape[2], xs.shape[3]
    HW = Ho * Wo

    # Native layout, no transpose: (N, Cin, Ho*Wo) is a free reshape of xs.
    x3 = xs.reshape(N, Cin, HW).astype(jnp.float32)

    tile, hw_pad = _derive_tile(HW, Cin, Cout, lane_cap=lane_cap)
    if hw_pad != HW:
        # Zero pads contribute exactly zero to z (no bias); corrected in pass 1.
        x3 = jnp.pad(x3, ((0, 0), (0, 0), (0, hw_pad - HW)))
    n_tiles = hw_pad // tile

    w2d = pw_weight.reshape(Cout, Cin).astype(jnp.float32)    # (Cout, Cin)
    g2d = bn_gamma.reshape(Cout, 1).astype(jnp.float32)
    b2d = bn_beta.reshape(Cout, 1).astype(jnp.float32)
    del pw_bias  # mathematically dead: cancels under BatchNorm mean subtraction

    m_true = N * HW
    pad_count = float(N * (hw_pad - HW))
    m_pad = N * hw_pad
    itemsize = 4

    # vmem limits derived from actual (double-buffered) block sizes + margin,
    # clamped well under v7x's 64 MiB per-TC physical VMEM.
    vmem1 = int(min(max(2 * Cin * tile * itemsize + (4 << 20), 8 << 20), 48 << 20))
    vmem2 = int(min(max(2 * (Cin + Cout) * tile * itemsize + (4 << 20), 8 << 20), 48 << 20))

    # ---- Pass 1: per-channel stats -> folded (weight, shift) --------------------
    aw, sh = pl.pallas_call(
        functools.partial(_stats_kernel, eps=eps, inv_m=1.0 / m_true,
                          pad_count=pad_count, cin=Cin),
        out_shape=(jax.ShapeDtypeStruct((Cout, Cin), jnp.float32),
                   jax.ShapeDtypeStruct((Cout, 1), jnp.float32)),
        grid_spec=pltpu.PrefetchScalarGridSpec(
            num_scalar_prefetch=0,
            grid=(N, n_tiles),
            in_specs=[pl.BlockSpec((None, Cin, tile), lambda n, t: (n, 0, t)),
                      pl.BlockSpec((Cout, Cin), lambda n, t: (0, 0)),
                      pl.BlockSpec((Cout, 1), lambda n, t: (0, 0)),
                      pl.BlockSpec((Cout, 1), lambda n, t: (0, 0))],
            out_specs=[pl.BlockSpec((Cout, Cin), lambda n, t: (0, 0)),
                       pl.BlockSpec((Cout, 1), lambda n, t: (0, 0))],
            scratch_shapes=[pltpu.VMEM((Cout, 1), jnp.float32)] * 3),
        compiler_params=pltpu.CompilerParams(
            dimension_semantics=("arbitrary", "arbitrary"),  # running reduction
            vmem_limit_bytes=vmem1),
        cost_estimate=pl.CostEstimate(
            flops=2 * m_pad * Cin * Cout + 5 * m_pad * Cout,
            transcendentals=Cout,
            bytes_accessed=itemsize * (Cin * m_pad + 2 * Cout * Cin + 4 * Cout)),
    )(x3, w2d, g2d, b2d)

    # ---- Pass 2: apply conv + BN + ReLU, lane-dense output in native layout -----
    out3 = pl.pallas_call(
        functools.partial(_apply_kernel, cin=Cin),
        out_shape=jax.ShapeDtypeStruct((N, Cout, hw_pad), jnp.float32),
        grid_spec=pltpu.PrefetchScalarGridSpec(
            num_scalar_prefetch=0,
            grid=(N, n_tiles),
            in_specs=[pl.BlockSpec((None, Cin, tile), lambda n, t: (n, 0, t)),
                      pl.BlockSpec((Cout, Cin), lambda n, t: (0, 0)),
                      pl.BlockSpec((Cout, 1), lambda n, t: (0, 0))],
            out_specs=pl.BlockSpec((None, Cout, tile), lambda n, t: (n, 0, t))),
        compiler_params=pltpu.CompilerParams(
            dimension_semantics=("parallel", "parallel"),    # megacore-shardable
            vmem_limit_bytes=vmem2),
        cost_estimate=pl.CostEstimate(
            flops=2 * m_pad * Cin * Cout + 2 * m_pad * Cout,
            transcendentals=0,
            bytes_accessed=itemsize * ((Cin + Cout) * m_pad + Cout * Cin + Cout)),
    )(x3, aw, sh)

    if hw_pad != HW:
        out3 = out3[:, :, :HW]
    # Free reshape — output is already in (N, Cout, HW) order, no transpose.
    return out3.reshape(N, Cout, Ho, Wo)


def _reference(x, pw_weight, pw_bias, bn_gamma, bn_beta, stride=2, eps=1e-5):
    # Pure-JAX reference of the effective forward path (includes the conv bias,
    # which must cancel under batch-norm).
    xs = x[:, :, ::stride, ::stride]
    y = jnp.einsum('nchw,oc->nohw', xs, pw_weight.reshape(pw_weight.shape[0], -1))
    y = y + pw_bias[None, :, None, None]
    mean = jnp.mean(y, axis=(0, 2, 3), keepdims=True)
    var = jnp.mean((y - mean) ** 2, axis=(0, 2, 3), keepdims=True)
    y = (y - mean) / jnp.sqrt(var + eps)
    y = y * bn_gamma[None, :, None, None] + bn_beta[None, :, None, None]
    return jnp.maximum(y, 0.0)


if __name__ == "__main__":
    def run_case(key, n, cin, cout, h, w, stride=2, lane_cap=131072):
        kx, kw, kb, kg, kbe = jax.random.split(key, 5)
        x = jax.random.normal(kx, (n, cin, h, w), dtype=jnp.float32)
        pw_w = 0.1 * jax.random.normal(kw, (cout, cin, 1, 1), dtype=jnp.float32)
        pw_b = 0.05 * jax.random.normal(kb, (cout,), dtype=jnp.float32)
        gamma = 1.0 + 0.1 * jax.random.normal(kg, (cout,), dtype=jnp.float32)
        beta = 0.1 * jax.random.normal(kbe, (cout,), dtype=jnp.float32)

        out = jax.block_until_ready(
            dsc_block_forward(x, pw_w, pw_b, gamma, beta,
                              stride=stride, lane_cap=lane_cap))
        ref = _reference(x, pw_w, pw_b, gamma, beta, stride=stride)
        ho = -(-h // stride)
        wo = -(-w // stride)
        assert out.shape == (n, cout, ho, wo), out.shape
        err = float(jnp.max(jnp.abs(out - ref)))
        assert jnp.allclose(out, ref, atol=1e-4, rtol=1e-4), f"mismatch: {err}"

    key = jax.random.PRNGKey(0)
    k1, k2, k3 = jax.random.split(key, 3)
    # Primary small case from the module spec (HW=64 -> padded to one 128-lane tile).
    run_case(k1, n=2, cin=4, cout=8, h=16, w=16)
    # Larger case: HW=1024 -> one 1024-lane tile per sample, stats across N grid steps.
    run_case(k2, n=2, cin=4, cout=8, h=64, w=64)
    # Forced multi-tile + tail padding: HW=324 -> 3 tiles of 128 lanes per sample,
    # exercises running accumulation, pipelining, and the pad-correction path.
    run_case(k3, n=2, cin=4, cout=8, h=36, w=36, lane_cap=128)

    print("KERNEL_OK")
</pallas_src>

<mosaic_0001>
module attributes {stable_mosaic.version = 11 : i64} {
  func.func @_stats_kernel(%arg0: i32, %arg1: i32, %arg2: memref<1x4x128xf32, #tpu.memory_space<vmem>>, %arg3: memref<8x4xf32, #tpu.memory_space<vmem>>, %arg4: memref<8x1xf32, #tpu.memory_space<vmem>>, %arg5: memref<8x1xf32, #tpu.memory_space<vmem>>, %arg6: memref<8x4xf32, #tpu.memory_space<vmem>>, %arg7: memref<8x1xf32, #tpu.memory_space<vmem>>, %arg8: memref<8x1xf32, #tpu.memory_space<vmem>>, %arg9: memref<8x1xf32, #tpu.memory_space<vmem>>, %arg10: memref<8x1xf32, #tpu.memory_space<vmem>>) attributes {dimension_semantics = [#tpu.dimension_semantics<arbitrary>, #tpu.dimension_semantics<arbitrary>], iteration_bounds = array<i64: 2, 1>, scalar_prefetch = 0 : i64, scratch_operands = 3 : i64, tpu.core_type = #tpu.core_type<tc>, window_params = [{transform_indices = @transform_0, window_bounds = array<i64: 1, 4, 128>}, {pipeline_mode = #tpu.pipeline_mode<synchronous>, transform_indices = @transform_1, window_bounds = array<i64: 8, 4>}, {pipeline_mode = #tpu.pipeline_mode<synchronous>, transform_indices = @transform_2, window_bounds = array<i64: 8, 1>}, {pipeline_mode = #tpu.pipeline_mode<synchronous>, transform_indices = @transform_3, window_bounds = array<i64: 8, 1>}, {pipeline_mode = #tpu.pipeline_mode<synchronous>, transform_indices = @transform_4, window_bounds = array<i64: 8, 4>}, {pipeline_mode = #tpu.pipeline_mode<synchronous>, transform_indices = @transform_5, window_bounds = array<i64: 8, 1>}]} {
    %c0_i32 = arith.constant 0 : i32
    %0 = arith.cmpi eq, %arg0, %c0_i32 : i32
    %c0_i32_0 = arith.constant 0 : i32
    %1 = arith.cmpi eq, %arg1, %c0_i32_0 : i32
    %2 = arith.andi %0, %1 : i1
    %c1_i32 = arith.constant 1 : i32
    %3 = arith.cmpi eq, %arg0, %c1_i32 : i32
    %c0_i32_1 = arith.constant 0 : i32
    %4 = arith.cmpi eq, %arg1, %c0_i32_1 : i32
    %5 = arith.andi %3, %4 : i1
    %c0 = arith.constant 0 : index
    %c0_2 = arith.constant 0 : index
    %c0_3 = arith.constant 0 : index
    %6 = vector.load %arg2[%c0, %c0_2, %c0_3] : memref<1x4x128xf32, #tpu.memory_space<vmem>>, vector<1x4x128xf32>
    %7 = vector.shape_cast %6 : vector<1x4x128xf32> to vector<4x128xf32>
    %c0_4 = arith.constant 0 : index
    %c0_5 = arith.constant 0 : index
    %8 = vector.load %arg3[%c0_4, %c0_5] : memref<8x4xf32, #tpu.memory_space<vmem>>, vector<8x4xf32>
    %9 = vector.extract_strided_slice %8 {offsets = [0, 0], sizes = [8, 1], strides = [1, 1]} : vector<8x4xf32> to vector<8x1xf32>
    %10 = vector.extract_strided_slice %7 {offsets = [0, 0], sizes = [1, 128], strides = [1, 1]} : vector<4x128xf32> to vector<1x128xf32>
    %11 = vector.broadcast %9 : vector<8x1xf32> to vector<8x128xf32>
    %12 = vector.broadcast %10 : vector<1x128xf32> to vector<8x128xf32>
    %13 = arith.mulf %11, %12 : vector<8x128xf32>
    %14 = vector.extract_strided_slice %8 {offsets = [0, 1], sizes = [8, 1], strides = [1, 1]} : vector<8x4xf32> to vector<8x1xf32>
    %15 = vector.extract_strided_slice %7 {offsets = [1, 0], sizes = [1, 128], strides = [1, 1]} : vector<4x128xf32> to vector<1x128xf32>
    %16 = vector.broadcast %14 : vector<8x1xf32> to vector<8x128xf32>
    %17 = vector.broadcast %15 : vector<1x128xf32> to vector<8x128xf32>
    %18 = arith.mulf %16, %17 : vector<8x128xf32>
    %19 = arith.addf %13, %18 : vector<8x128xf32>
    %20 = vector.extract_strided_slice %8 {offsets = [0, 2], sizes = [8, 1], strides = [1, 1]} : vector<8x4xf32> to vector<8x1xf32>
    %21 = vector.extract_strided_slice %7 {offsets = [2, 0], sizes = [1, 128], strides = [1, 1]} : vector<4x128xf32> to vector<1x128xf32>
    %22 = vector.broadcast %20 : vector<8x1xf32> to vector<8x128xf32>
    %23 = vector.broadcast %21 : vector<1x128xf32> to vector<8x128xf32>
    %24 = arith.mulf %22, %23 : vector<8x128xf32>
    %25 = arith.addf %19, %24 : vector<8x128xf32>
    %26 = vector.extract_strided_slice %8 {offsets = [0, 3], sizes = [8, 1], strides = [1, 1]} : vector<8x4xf32> to vector<8x1xf32>
    %27 = vector.extract_strided_slice %7 {offsets = [3, 0], sizes = [1, 128], strides = [1, 1]} : vector<4x128xf32> to vector<1x128xf32>
    %28 = vector.broadcast %26 : vector<8x1xf32> to vector<8x128xf32>
    %29 = vector.broadcast %27 : vector<1x128xf32> to vector<8x128xf32>
    %30 = arith.mulf %28, %29 : vector<8x128xf32>
    %31 = arith.addf %25, %30 : vector<8x128xf32>
    %32 = arith.extui %2 : i1 to i32
    %c0_i32_6 = arith.constant 0 : i32
    %33 = arith.cmpi ne, %32, %c0_i32_6 : i32
    scf.if %33 {
      %cst_19 = arith.constant dense<0.000000e+00> : vector<8xf32>
      %50 = vector.multi_reduction <add>, %31, %cst_19 [1] : vector<8x128xf32> to vector<8xf32>
      %51 = vector.shape_cast %50 : vector<8xf32> to vector<8x1xf32>
      %cst_20 = arith.constant 1.280000e+02 : f32
      %52 = vector.broadcast %cst_20 : f32 to vector<8x1xf32>
      %53 = arith.divf %51, %52 : vector<8x1xf32>
      %c0_21 = arith.constant 0 : index
      %c0_22 = arith.constant 0 : index
      %54 = vector.load %arg8[%c0_21, %c0_22] : memref<8x1xf32, #tpu.memory_space<vmem>>, vector<8x1xf32>
      tpu.vector_store %arg8[%c0_21, %c0_22], %53 {strides = array<i32>} : memref<8x1xf32, #tpu.memory_space<vmem>>, vector<8x1xf32>,
      %cst_23 = arith.constant 0.000000e+00 : f32
      %55 = vector.broadcast %cst_23 : f32 to vector<8x1xf32>
      %c0_24 = arith.constant 0 : index
      %c0_25 = arith.constant 0 : index
      %56 = vector.load %arg9[%c0_24, %c0_25] : memref<8x1xf32, #tpu.memory_space<vmem>>, vector<8x1xf32>
      tpu.vector_store %arg9[%c0_24, %c0_25], %55 {strides = array<i32>} : memref<8x1xf32, #tpu.memory_space<vmem>>, vector<8x1xf32>,
      %cst_26 = arith.constant 0.000000e+00 : f32
      %57 = vector.broadcast %cst_26 : f32 to vector<8x1xf32>
      %c0_27 = arith.constant 0 : index
      %c0_28 = arith.constant 0 : index
      %58 = vector.load %arg10[%c0_27, %c0_28] : memref<8x1xf32, #tpu.memory_space<vmem>>, vector<8x1xf32>
      tpu.vector_store %arg10[%c0_27, %c0_28], %57 {strides = array<i32>} : memref<8x1xf32, #tpu.memory_space<vmem>>, vector<8x1xf32>,
    } else {
    }
    %c0_7 = arith.constant 0 : index
    %c0_8 = arith.constant 0 : index
    %34 = vector.load %arg8[%c0_7, %c0_8] : memref<8x1xf32, #tpu.memory_space<vmem>>, vector<8x1xf32>
    %35 = vector.broadcast %34 : vector<8x1xf32> to vector<8x128xf32>
    %36 = arith.subf %31, %35 : vector<8x128xf32>
    %c0_9 = arith.constant 0 : index
    %c0_10 = arith.constant 0 : index
    %37 = vector.load %arg9[%c0_9, %c0_10] : memref<8x1xf32, #tpu.memory_space<vmem>>, vector<8x1xf32>
    %cst = arith.constant dense<0.000000e+00> : vector<8xf32>
    %38 = vector.multi_reduction <add>, %36, %cst [1] : vector<8x128xf32> to vector<8xf32>
    %39 = vector.shape_cast %38 : vector<8xf32> to vector<8x1xf32>
    %40 = arith.addf %37, %39 : vector<8x1xf32>
    %c0_11 = arith.constant 0 : index
    %c0_12 = arith.constant 0 : index
    %41 = vector.load %arg9[%c0_11, %c0_12] : memref<8x1xf32, #tpu.memory_space<vmem>>, vector<8x1xf32>
    tpu.vector_store %arg9[%c0_11, %c0_12], %40 {strides = array<i32>} : memref<8x1xf32, #tpu.memory_space<vmem>>, vector<8x1xf32>,
    %c0_13 = arith.constant 0 : index
    %c0_14 = arith.constant 0 : index
    %42 = vector.load %arg10[%c0_13, %c0_14] : memref<8x1xf32, #tpu.memory_space<vmem>>, vector<8x1xf32>
    %43 = arith.mulf %36, %36 : vector<8x128xf32>
    %cst_15 = arith.constant dense<0.000000e+00> : vector<8xf32>
    %44 = vector.multi_reduction <add>, %43, %cst_15 [1] : vector<8x128xf32> to vector<8xf32>
    %45 = vector.shape_cast %44 : vector<8xf32> to vector<8x1xf32>
    %46 = arith.addf %42, %45 : vector<8x1xf32>
    %c0_16 = arith.constant 0 : index
    %c0_17 = arith.constant 0 : index
    %47 = vector.load %arg10[%c0_16, %c0_17] : memref<8x1xf32, #tpu.memory_space<vmem>>, vector<8x1xf32>
    tpu.vector_store %arg10[%c0_16, %c0_17], %46 {strides = array<i32>} : memref<8x1xf32, #tpu.memory_space<vmem>>, vector<8x1xf32>,
    %48 = arith.extui %5 : i1 to i32
    %c0_i32_18 = arith.constant 0 : i32
    %49 = arith.cmpi ne, %48, %c0_i32_18 : i32
    scf.if %49 {
      %c0_19 = arith.constant 0 : index
      %c0_20 = arith.constant 0 : index
      %50 = vector.load %arg8[%c0_19, %c0_20] : memref<8x1xf32, #tpu.memory_space<vmem>>, vector<8x1xf32>
      %c0_21 = arith.constant 0 : index
      %c0_22 = arith.constant 0 : index
      %51 = vector.load %arg9[%c0_21, %c0_22] : memref<8x1xf32, #tpu.memory_space<vmem>>, vector<8x1xf32>
      %cst_23 = arith.constant 1.280000e+02 : f32
      %52 = vector.broadcast %cst_23 : f32 to vector<8x1xf32>
      %53 = arith.mulf %52, %50 : vector<8x1xf32>
      %54 = arith.addf %51, %53 : vector<8x1xf32>
      %c0_24 = arith.constant 0 : index
      %c0_25 = arith.constant 0 : index
      %55 = vector.load %arg10[%c0_24, %c0_25] : memref<8x1xf32, #tpu.memory_space<vmem>>, vector<8x1xf32>
      %56 = arith.mulf %50, %50 : vector<8x1xf32>
      %cst_26 = arith.constant 1.280000e+02 : f32
      %57 = vector.broadcast %cst_26 : f32 to vector<8x1xf32>
      %58 = arith.mulf %57, %56 : vector<8x1xf32>
      %59 = arith.subf %55, %58 : vector<8x1xf32>
      %cst_27 = arith.constant 7.812500e-03 : f32
      %60 = vector.broadcast %cst_27 : f32 to vector<8x1xf32>
      %61 = arith.mulf %54, %60 : vector<8x1xf32>
      %cst_28 = arith.constant 7.812500e-03 : f32
      %62 = vector.broadcast %cst_28 : f32 to vector<8x1xf32>
      %63 = arith.mulf %59, %62 : vector<8x1xf32>
      %64 = arith.mulf %61, %61 : vector<8x1xf32>
      %65 = arith.subf %63, %64 : vector<8x1xf32>
      %cst_29 = arith.constant 0.000000e+00 : f32
      %66 = vector.broadcast %cst_29 : f32 to vector<8x1xf32>
      %67 = arith.maximumf %65, %66 : vector<8x1xf32>
      %c0_30 = arith.constant 0 : index
      %c0_31 = arith.constant 0 : index
      %68 = vector.load %arg4[%c0_30, %c0_31] : memref<8x1xf32, #tpu.memory_space<vmem>>, vector<8x1xf32>
      %cst_32 = arith.constant 9.99999974E-6 : f32
      %69 = vector.broadcast %cst_32 : f32 to vector<8x1xf32>
      %70 = arith.addf %67, %69 : vector<8x1xf32>
      %71 = math.rsqrt %70 : vector<8x1xf32>
      %72 = arith.mulf %68, %71 : vector<8x1xf32>
      %73 = vector.broadcast %72 : vector<8x1xf32> to vector<8x4xf32>
      %74 = arith.mulf %8, %73 : vector<8x4xf32>
      %c0_33 = arith.constant 0 : index
      %c0_34 = arith.constant 0 : index
      %75 = vector.load %arg6[%c0_33, %c0_34] : memref<8x4xf32, #tpu.memory_space<vmem>>, vector<8x4xf32>
      tpu.vector_store %arg6[%c0_33, %c0_34], %74 {strides = array<i32>} : memref<8x4xf32, #tpu.memory_space<vmem>>, vector<8x4xf32>,
      %c0_35 = arith.constant 0 : index
      %c0_36 = arith.constant 0 : index
      %76 = vector.load %arg5[%c0_35, %c0_36] : memref<8x1xf32, #tpu.memory_space<vmem>>, vector<8x1xf32>
      %77 = arith.addf %61, %50 : vector<8x1xf32>
      %78 = arith.mulf %77, %72 : vector<8x1xf32>
      %79 = arith.subf %76, %78 : vector<8x1xf32>
      %c0_37 = arith.constant 0 : index
      %c0_38 = arith.constant 0 : index
      %80 = vector.load %arg7[%c0_37, %c0_38] : memref<8x1xf32, #tpu.memory_space<vmem>>, vector<8x1xf32>
      tpu.vector_store %arg7[%c0_37, %c0_38], %79 {strides = array<i32>} : memref<8x1xf32, #tpu.memory_space<vmem>>, vector<8x1xf32>,
    } else {
    }
    return
  }
  func.func @transform_0(%arg0: i32, %arg1: i32) -> (i32, i32, i32) {
    %c0_i32 = arith.constant 0 : i32
    %c0_i32_0 = arith.constant 0 : i32
    return %arg0, %c0_i32, %arg1 : i32, i32, i32
  }
  func.func @transform_1(%arg0: i32, %arg1: i32) -> (i32, i32) {
    %c0_i32 = arith.constant 0 : i32
    %c0_i32_0 = arith.constant 0 : i32
    %c0_i32_1 = arith.constant 0 : i32
    return %c0_i32, %c0_i32_0 : i32, i32
  }
  func.func @transform_2(%arg0: i32, %arg1: i32) -> (i32, i32) {
    %c0_i32 = arith.constant 0 : i32
    %c0_i32_0 = arith.constant 0 : i32
    %c0_i32_1 = arith.constant 0 : i32
    return %c0_i32, %c0_i32_0 : i32, i32
  }
  func.func @transform_3(%arg0: i32, %arg1: i32) -> (i32, i32) {
    %c0_i32 = arith.constant 0 : i32
    %c0_i32_0 = arith.constant 0 : i32
    %c0_i32_1 = arith.constant 0 : i32
    return %c0_i32, %c0_i32_0 : i32, i32
  }
  func.func @transform_4(%arg0: i32, %arg1: i32) -> (i32, i32) {
    %c0_i32 = arith.constant 0 : i32
    %c0_i32_0 = arith.constant 0 : i32
    %c0_i32_1 = arith.constant 0 : i32
    return %c0_i32, %c0_i32_0 : i32, i32
  }
  func.func @transform_5(%arg0: i32, %arg1: i32) -> (i32, i32) {
    %c0_i32 = arith.constant 0 : i32
    %c0_i32_0 = arith.constant 0 : i32
    %c0_i32_1 = arith.constant 0 : i32
    return %c0_i32, %c0_i32_0 : i32, i32
  }
}

</mosaic_0001>

<bundles_post_ra>
// kernel: tpu_custom_call.1
= control target key start
LH: loop header
LB: loop body
LE: loop exit
PB: predicated region body
PF: predicated region fallthrough
CT: control target
= control target key end

     0   :  { %s493_s18 = smov 0   ;;  %s495_s19 = smov 0   ;;  %s558_s0 = inlined_call_operand.vmem [shape: f32[2,4,128], index: 0, kind: input, shape index: {}]   ;;  %s559_s1 = inlined_call_operand.vmem [shape: f32[8,4], index: 1, kind: input, shape index: {}]   ;;  %s560_s2 = inlined_call_operand.vmem [shape: f32[8,1], index: 2, kind: input, shape index: {}]   ;;  %s561_s3 = inlined_call_operand.vmem [shape: f32[8,1], index: 3, kind: input, shape index: {}]   ;;  %s562_s4 = inlined_call_operand.vmem [shape: f32[8,4], index: 4, kind: output, shape index: {0}]   ;;  %s563_s5 = inlined_call_operand.vmem [shape: f32[8,1], index: 5, kind: output, shape index: {1}]  }
   0x1   :  { %s497_s20 = smov 0  }
   0x2 LB: > { %s28_s21 = sadd.s32 1, %s451_s19  ;;  %p386_p0 = scmp.ge.s32.totalorder %s455_s20, 1  ;;  %s455_s20 = sphi %s497_s20, %s16_s20   ;;  %s451_s19 = sphi %s495_s19, %s565_s19   ;;  %s447_s18 = sphi %s493_s18, %s564_s18  }
   0x3   : > { %p30_p1 = scmp.ge.s32.totalorder %s28_s21, 2  ;;  %p196_p2 = scmp.lt.s32.totalorder %s455_s20, 3 }
   0x5   : > { %s567_s21 = smov (%p30_p1, %s28_s21), 0  ;;  %p197_p3 = pnand %p386_p0, %p196_p2 }
   0x6   : > { %v516_v0 = vld [vmem:[%s559_s1] sm:$0xff] (!%p197_p3)  ;;  %v457_v1 = vmov (!%p197_p3), 0   ;;  %v458_v2 = vmov (!%p197_p3), 2   ;;  %v459_v3 = vmov (!%p197_p3), 1   ;;  %v460_v4 = vmov (!%p197_p3), 3   ;;  %p228_p4 = scmp.eq.s32.totalorder (!%p197_p3), %s447_s18, 0 }
   0x7   : > { %200 = sbr.rel (%p197_p3) target bundleno = 739 (0x2e3), region = 36  ;;  %424 = vset.pattern.permute.xlu0 (!%p197_p3), %v457_v1  ;;  %426 = vset.pattern.permute.xlu1 (!%p197_p3), %v458_v2  ;;  %p232_p5 = scmp.eq.s32.totalorder (!%p197_p3), %s447_s18, 1  ;;  %v242_v5 = vlaneseq (!%p197_p3) }
   0x8   : > { %239 = vperm.xlu0 (!%p197_p3), %424, %v516_v0   ;;  %258 = vperm.xlu1 (!%p197_p3), %426, %v516_v0   ;;  %p221_p6 = scmp.lt.s32.totalorder (!%p197_p3), %s447_s18, 1 }
   0x9   : > { %v243_v6 = vshrl.u32 (!%p197_p3), %v242_v5, 7 }
   0xb   : > { %v244_v7 = vsub.s32 (!%p197_p3), 0, %v243_v6  ;;  %v253_v8 = vsub.s32 (!%p197_p3), 1, %v243_v6  ;;  %v263_v11 = vsub.s32 (!%p197_p3), 2, %v243_v6  ;;  %v273_v13 = vsub.s32 (!%p197_p3), 3, %v243_v6 }
   0xc   : > { %425 = vset.pattern.permute.xlu0 (!%p197_p3), %v459_v3  ;;  %427 = vset.pattern.permute.xlu1 (!%p197_p3), %v460_v4 }
   0xd   : > { %248 = vperm.xlu0 (!%p197_p3), %425, %v516_v0   ;;  %268 = vperm.xlu1 (!%p197_p3), %427, %v516_v0  }
   0xe   : > { %s222_s24 = scalar_select %p221_p6, %s447_s18, 1 }
   0xf   : > { %vm283_vm0 = vcmask (%p228_p4), 7168   ;;  %v461_v27 = vmov (%p228_p4), 0.0  }
  0x10   : > { %s387_s25 = sshll.u32 %s222_s24, 2  ;;  %285 = vst.msk [vmem:[#allocation3] sm:$0xff] (%p228_p4), %vm283_vm0, %v461_v27  ;;  %286 = vst.msk [vmem:[#allocation4] sm:$0xff] (%p228_p4), %vm283_vm0, %v461_v27 }
  0x11   : > { %428 = vset.pattern.permute.xlu0 %v460_v4  ;;  %s227_s28 = scalar_lea.vmem %s558_s0, %s387_s25 }
  0x12   : > { %v235_v9 = vld [vmem:[%s227_s28] sm:$0xf] }
  0x13   : > { %v245_v14 = vrot.slane %v235_v9, %v244_v7  ;;  %v254_v15 = vrot.slane %v235_v9, %v253_v8  ;;  %v264_v16 = vrot.slane %v235_v9, %v263_v11  ;;  %v274_v17 = vrot.slane %v235_v9, %v273_v13 }
  0x87   : > { %v240_v10 = vpop.permute.xlu0 %239  ;;  %v259_v12 = vpop.permute.xlu1 %258 }
  0x88   : > { %v246_v20 = vmul.f32 %v245_v14, %v240_v10  ;;  %v265_v22 = vmul.f32 %v264_v16, %v259_v12 }
  0x8c   : > { %v249_v18 = vpop.permute.xlu0 %248  ;;  %v269_v19 = vpop.permute.xlu1 %268 }
  0x8d   : > { %v255_v21 = vmul.f32 %v254_v15, %v249_v18  ;;  %v275_v24 = vmul.f32 %v274_v17, %v269_v19  ;;  %278 = sbr.rel (!%p228_p4) target bundleno = 294 (0x126), region = 40 }
  0x8f   : > { %v256_v23 = vadd.f32 %v255_v21, %v246_v20 }
  0x91   : > { %v266_v25 = vadd.f32 %v265_v22, %v256_v23 }
  0x93   : > { %v276_v26 = vadd.f32 %v275_v24, %v266_v25 }
  0x95   : > { %279 = vadd.xlane.f32.xlu0 %v276_v26 }
 0x122   : > { %v280_v28 = vpop.xlane.xlu0 %279 }
 0x123   : > { %v282_v29 = vmul.f32 0.0078125, %v280_v28 }
 0x125   : > { %284 = vst.msk [vmem:[#allocation2] sm:$0xff] %vm283_vm0, %v282_v29 }
 0x126 PF: > { %429 = vset.pattern.permute.xlu0 %v457_v1  ;;  %v294_v34 = vld [vmem:[#allocation3] sm:$0xff]  ;;  %vm298_vm1 = vcmask 7168   ;;  %v300_v36 = vld [vmem:[#allocation4] sm:$0xff]  ;;  %v462_v42 = vmov (%p232_p5), 0   ;;  %v321_v55 = vld [vmem:[%s560_s2] sm:$0xff] (%p232_p5)  ;;  %vm331_vm2 = vcmask (%p232_p5), 31744  }
 0x127   : > { %v333_v59 = vld [vmem:[%s561_s3] sm:$0xff] (%p232_p5) }
 0x12c   : > { %v287_v30 = vld [vmem:[#allocation2] sm:$0xff] }
 0x12d   : > { %290 = vperm.xlu0 %429, %v287_v30   ;;  %v308_v40 = vld [vmem:[#allocation2] sm:$0xff] (%p232_p5) }
 0x12e   : > { %v310_v43 = vmul.f32 (%p232_p5), 128.0, %v308_v40  ;;  %v313_v44 = vmul.f32 (%p232_p5), %v308_v40, %v308_v40 }
 0x130   : > { %v314_v47 = vmul.f32 (%p232_p5), 128.0, %v313_v44 }
 0x131   : > { %430 = vset.pattern.permute.xlu0 (%p232_p5), %v462_v42 }
 0x1ac   : > { %v291_v31 = vpop.permute.xlu0 %290 }
 0x1ad   : > { %v293_v32 = vsub.f32 %v276_v26, %v291_v31 }
 0x1af   : > { %295 = vadd.xlane.f32.xlu0 %v293_v32  ;;  %v301_v33 = vmul.f32 %v293_v32, %v293_v32 }
 0x1b1   : > { %302 = vadd.xlane.f32.xlu1 %v301_v33 }
 0x23b   : > { %307 = sbr.rel (!%p232_p5) target bundleno = 739 (0x2e3), region = 44 }
 0x23c   : > { %v296_v35 = vpop.xlane.xlu0 %295 }
 0x23d   : > { %v297_v37 = vadd.f32 %v296_v35, %v294_v34 }
 0x23e   : > { %v303_v38 = vpop.xlane.xlu1 %302 }
 0x23f   : > { %299 = vst.msk [vmem:[#allocation3] sm:$0xff] %vm298_vm1, %v297_v37  ;;  %v304_v39 = vadd.f32 %v303_v38, %v300_v36 }
 0x241   : > { %305 = vst.msk [vmem:[#allocation4] sm:$0xff] %vm298_vm1, %v304_v39 }
 0x246   : > { %v309_v41 = vld [vmem:[#allocation3] sm:$0xff] }
 0x247   : > { %v311_v46 = vadd.f32 %v310_v43, %v309_v41 }
 0x248   : > { %v312_v45 = vld [vmem:[#allocation4] sm:$0xff] }
 0x249   : > { %v315_v48 = vsub.f32 %v312_v45, %v314_v47  ;;  %v316_v49 = vmul.f32 0.0078125, %v311_v46 }
 0x24b   : > { %v317_v50 = vmul.f32 0.0078125, %v315_v48  ;;  %v318_v51 = vmul.f32 %v316_v49, %v316_v49  ;;  %v334_v56 = vadd.f32 %v316_v49, %v308_v40 }
 0x24d   : > { %v319_v52 = vsub.f32 %v317_v50, %v318_v51 }
 0x24f   : > { %v320_v53 = vmax.f32 %v319_v52, 0.0 }
 0x251   : > { %v322_v54 = vadd.f32 1e-05, %v320_v53 }
 0x253   : > { %431 = vrsqrt.f32 %v322_v54 }
 0x25d   : > { %v432_v57 = vpop.eup %431 }
 0x25e   : > { %v324_v58 = vmul.f32 %v432_v57, %v321_v55 }
 0x260   : > { %327 = vperm.xlu0 %430, %v324_v58   ;;  %v335_v60 = vmul.f32 %v334_v56, %v324_v58 }
 0x262   : > { %v336_v61 = vsub.f32 %v333_v59, %v335_v60 }
 0x264   : > { %337 = vst.msk [vmem:[%s563_s5] sm:$0xff] %vm298_vm1, %v336_v61 }
 0x2df   : > { %v328_v62 = vpop.permute.xlu0 %327 }
 0x2e0   : > { %v330_v63 = vmul.f32 %v328_v62, %v516_v0 }
 0x2e2   : > { %332 = vst.msk [vmem:[%s562_s4] sm:$0xff] %vm331_vm2, %v330_v63 }
 0x2e3 PF: > { %s16_s20 = sadd.s32 1, %s455_s20   ;;  %s564_s18 = smov %s451_s19 }
 0x2e4   : > { %p13_p7 = scmp.ge.s32.totalorder %s16_s20, 4   ;;  %s565_s19 = smov %s567_s21 }
 0x2e6   :  { %15 = sbr.rel (!%p13_p7) target bundleno = 2 (0x2), region = 78 }

</bundles_post_ra>
